<compile_context>
chip_gen: v5e
topology: v5e:2x2
jax: 0.10.0
libtpu: 0.0.40
codegen_flags: <defaults>
</compile_context>

<pallas_src>
import math

import jax
import jax.numpy as jnp
from jax.experimental import pallas as pl
from jax.experimental.pallas import tpu as pltpu

_LANE = 128
_SUBLANE = 8


def _round_up(x, m):
    return ((x + m - 1) // m) * m


def _gen_prob_kernel(att_ref, hs_ref, inp_ref, w_att_ref, w_hs_ref, w_inp_ref,
                     b_ref, o_ref):
    # att_ref: [Bt, A], hs_ref: [Bt, H], inp_ref: [Bt, E] (VMEM)
    # w_*_ref: [1, A]/[1, H]/[1, E] (VMEM), b_ref: [1, 1] (SMEM)
    # o_ref:   [Bt, 1] (VMEM)
    s = jnp.sum(att_ref[...].astype(jnp.float32)
                * w_att_ref[...].astype(jnp.float32), axis=-1, keepdims=True)
    s = s + jnp.sum(hs_ref[...].astype(jnp.float32)
                    * w_hs_ref[...].astype(jnp.float32), axis=-1, keepdims=True)
    s = s + jnp.sum(inp_ref[...].astype(jnp.float32)
                    * w_inp_ref[...].astype(jnp.float32), axis=-1, keepdims=True)
    o_ref[...] = jax.nn.sigmoid(s + b_ref[0, 0])


def _vmem_capacity_bytes():
    try:
        return int(pltpu.get_tpu_info().vmem_capacity_bytes)
    except Exception:
        # Conservative fallback: v7x per-TensorCore VMEM.
        return 64 * 1024 * 1024


def generation_probability(h_attention, decoder_hs, inp, w_att, w_hs, w_inp,
                           bias, *, small_batch_threshold=128):
    """h_attention: [B,1,A]; decoder_hs: [B,1,H]; inp: [B,1,E].

    w_att: [A], w_hs: [H], w_inp: [E], bias: scalar/shape-(1,).
    Returns p_gen of shape [B, 1] (torch's sigmoid(...).squeeze(1)).
    """
    B, _, A = h_attention.shape
    H = decoder_hs.shape[-1]
    E = inp.shape[-1]

    # Drop the singleton time dim (free reshape); keep incoming dtypes.
    x_att = h_attention.reshape(B, A)
    x_hs = decoder_hs.reshape(B, H)
    x_inp = inp.reshape(B, E)
    wa = w_att.reshape(1, A)
    wh = w_hs.reshape(1, H)
    wi = w_inp.reshape(1, E)
    b = jnp.asarray(bias, jnp.float32).reshape(1, 1)

    if B <= small_batch_threshold:
        # TODO(synk): for the true decode case (B <= ~64) this gate should be
        # fused into the kernel producing h_attention instead of paying
        # standalone pallas_call overhead; kept standalone per the module spec.
        return pl.pallas_call(
            _gen_prob_kernel,
            out_shape=jax.ShapeDtypeStruct((B, 1), jnp.float32),
            in_specs=[pl.BlockSpec(memory_space=pltpu.MemorySpace.VMEM)] * 6
            + [pl.BlockSpec(memory_space=pltpu.MemorySpace.SMEM)],
            out_specs=pl.BlockSpec(memory_space=pltpu.MemorySpace.VMEM),
        )(x_att, x_hs, x_inp, wa, wh, wi, b)

    # --- Large batch: stream lane-aligned B tiles, no wrapper copies. ---
    def _row_bytes(arr):
        # VMEM footprint of one activation row (lane-padded).
        return _round_up(arr.shape[-1], _LANE) * arr.dtype.itemsize

    row_bytes = _row_bytes(x_att) + _row_bytes(x_hs) + _row_bytes(x_inp)

    vmem_cap = _vmem_capacity_bytes()
    # Stay within v7x's 64 MiB VMEM and within a sane scoped limit everywhere.
    vmem_budget = min(vmem_cap // 2, 32 * 1024 * 1024)
    input_budget = (vmem_budget * 3) // 4        # headroom for output/weights
    tile_b = input_budget // (2 * row_bytes)     # 2x: double-buffered inputs
    tile_b = min(tile_b, 4096)
    # Keep >=2 (ideally >=4) grid steps so multi-TC chips (v7x) can shard the
    # parallel B axis; per-step overhead (~0.35 us) is negligible here.
    tile_b = min(tile_b,
                 max(small_batch_threshold, _round_up(pl.cdiv(B, 4), _SUBLANE)))
    tile_b = max(_SUBLANE, (tile_b // _SUBLANE) * _SUBLANE)

    # TODO(synk): a lane-dense (num_tiles, tile_b) output layout would avoid
    # masked single-lane stores; output bytes are B*4 so only worth it if the
    # store epilogue shows up exposed in a profile.
    return pl.pallas_call(
        _gen_prob_kernel,
        out_shape=jax.ShapeDtypeStruct((B, 1), jnp.float32),
        grid=(pl.cdiv(B, tile_b),),
        in_specs=[
            pl.BlockSpec((tile_b, A), lambda i: (i, 0)),
            pl.BlockSpec((tile_b, H), lambda i: (i, 0)),
            pl.BlockSpec((tile_b, E), lambda i: (i, 0)),
            pl.BlockSpec((1, A), lambda i: (0, 0)),
            pl.BlockSpec((1, H), lambda i: (0, 0)),
            pl.BlockSpec((1, E), lambda i: (0, 0)),
            pl.BlockSpec(memory_space=pltpu.MemorySpace.SMEM),
        ],
        out_specs=pl.BlockSpec((tile_b, 1), lambda i: (i, 0)),
        compiler_params=pltpu.CompilerParams(
            dimension_semantics=("parallel",),
            vmem_limit_bytes=vmem_budget),
    )(x_att, x_hs, x_inp, wa, wh, wi, b)


def init_params(key, embedding_size, hidden_size, attention_size):
    """Deterministic init mirroring nn.Linear default + the module's bias init."""
    k_att, k_hs, k_inp, k_b = jax.random.split(key, 4)
    stdev = 1.0 / math.sqrt(100.0)
    w_att = jax.random.uniform(
        k_att, (attention_size,), jnp.float32,
        -1.0 / math.sqrt(attention_size), 1.0 / math.sqrt(attention_size))
    w_hs = jax.random.uniform(
        k_hs, (hidden_size,), jnp.float32,
        -1.0 / math.sqrt(hidden_size), 1.0 / math.sqrt(hidden_size))
    w_inp = jax.random.uniform(
        k_inp, (embedding_size,), jnp.float32,
        -1.0 / math.sqrt(embedding_size), 1.0 / math.sqrt(embedding_size))
    bias = jax.random.uniform(k_b, (1,), jnp.float32, -stdev, stdev)
    return w_att, w_hs, w_inp, bias


def _reference(h_attention, decoder_hs, inp, w_att, w_hs, w_inp, bias):
    p = (h_attention @ w_att.reshape(-1, 1)
         + decoder_hs @ w_hs.reshape(-1, 1)
         + inp @ w_inp.reshape(-1, 1)
         + bias)
    return jax.nn.sigmoid(p).squeeze(1)


if __name__ == "__main__":
    embedding_size = 32
    hidden_size = 64
    attention_size = 48

    key = jax.random.PRNGKey(0)
    k_h, k_d, k_x, k_p = jax.random.split(key, 4)
    w_att, w_hs, w_inp, bias = init_params(
        k_p, embedding_size, hidden_size, attention_size)

    # --- Small-batch path (grid-less, matches the module's B x 1 x D usage) ---
    B = 2
    h_attention = jax.random.normal(k_h, (B, 1, attention_size), jnp.float32)
    decoder_hs = jax.random.normal(k_d, (B, 1, hidden_size), jnp.float32)
    inp = jax.random.normal(k_x, (B, 1, embedding_size), jnp.float32)

    p_gen = generation_probability(
        h_attention, decoder_hs, inp, w_att, w_hs, w_inp, bias)
    p_gen = jax.block_until_ready(p_gen)
    ref = _reference(h_attention, decoder_hs, inp, w_att, w_hs, w_inp, bias)
    assert p_gen.shape == (B, 1), p_gen.shape
    assert jnp.allclose(p_gen, ref, atol=1e-5, rtol=1e-5), (p_gen, ref)

    # --- Large-batch path (B-tiled, parallel grid axis, ragged last block) ---
    B2 = 640
    h2 = jax.random.normal(k_h, (B2, 1, attention_size), jnp.float32)
    d2 = jax.random.normal(k_d, (B2, 1, hidden_size), jnp.float32)
    x2 = jax.random.normal(k_x, (B2, 1, embedding_size), jnp.float32)

    p_gen2 = generation_probability(h2, d2, x2, w_att, w_hs, w_inp, bias)
    p_gen2 = jax.block_until_ready(p_gen2)
    ref2 = _reference(h2, d2, x2, w_att, w_hs, w_inp, bias)
    assert p_gen2.shape == (B2, 1), p_gen2.shape
    assert jnp.allclose(p_gen2, ref2, atol=1e-5, rtol=1e-5), (p_gen2, ref2)

    print("KERNEL_OK")
</pallas_src>

<mosaic_0001>
module attributes {stable_mosaic.version = 11 : i64} {
  func.func @_gen_prob_kernel(%arg0: memref<2x48xf32, #tpu.memory_space<vmem>>, %arg1: memref<2x64xf32, #tpu.memory_space<vmem>>, %arg2: memref<2x32xf32, #tpu.memory_space<vmem>>, %arg3: memref<1x48xf32, #tpu.memory_space<vmem>>, %arg4: memref<1x64xf32, #tpu.memory_space<vmem>>, %arg5: memref<1x32xf32, #tpu.memory_space<vmem>>, %arg6: memref<1x1xf32, #tpu.memory_space<smem>>, %arg7: memref<2x1xf32, #tpu.memory_space<vmem>>) attributes {dimension_semantics = [], scalar_prefetch = 0 : i64, scratch_operands = 0 : i64, tpu.core_type = #tpu.core_type<tc>} {
    %c0 = arith.constant 0 : index
    %c0_0 = arith.constant 0 : index
    %0 = vector.load %arg0[%c0, %c0_0] : memref<2x48xf32, #tpu.memory_space<vmem>>, vector<2x48xf32>
    %c0_1 = arith.constant 0 : index
    %c0_2 = arith.constant 0 : index
    %1 = vector.load %arg3[%c0_1, %c0_2] : memref<1x48xf32, #tpu.memory_space<vmem>>, vector<1x48xf32>
    %2 = vector.broadcast %1 : vector<1x48xf32> to vector<2x48xf32>
    %3 = arith.mulf %0, %2 : vector<2x48xf32>
    %cst = arith.constant dense<0.000000e+00> : vector<2xf32>
    %4 = vector.multi_reduction <add>, %3, %cst [1] : vector<2x48xf32> to vector<2xf32>
    %5 = vector.shape_cast %4 : vector<2xf32> to vector<2x1xf32>
    %c0_3 = arith.constant 0 : index
    %c0_4 = arith.constant 0 : index
    %6 = vector.load %arg1[%c0_3, %c0_4] : memref<2x64xf32, #tpu.memory_space<vmem>>, vector<2x64xf32>
    %c0_5 = arith.constant 0 : index
    %c0_6 = arith.constant 0 : index
    %7 = vector.load %arg4[%c0_5, %c0_6] : memref<1x64xf32, #tpu.memory_space<vmem>>, vector<1x64xf32>
    %8 = vector.broadcast %7 : vector<1x64xf32> to vector<2x64xf32>
    %9 = arith.mulf %6, %8 : vector<2x64xf32>
    %cst_7 = arith.constant dense<0.000000e+00> : vector<2xf32>
    %10 = vector.multi_reduction <add>, %9, %cst_7 [1] : vector<2x64xf32> to vector<2xf32>
    %11 = vector.shape_cast %10 : vector<2xf32> to vector<2x1xf32>
    %12 = arith.addf %5, %11 : vector<2x1xf32>
    %c0_8 = arith.constant 0 : index
    %c0_9 = arith.constant 0 : index
    %13 = vector.load %arg2[%c0_8, %c0_9] : memref<2x32xf32, #tpu.memory_space<vmem>>, vector<2x32xf32>
    %c0_10 = arith.constant 0 : index
    %c0_11 = arith.constant 0 : index
    %14 = vector.load %arg5[%c0_10, %c0_11] : memref<1x32xf32, #tpu.memory_space<vmem>>, vector<1x32xf32>
    %15 = vector.broadcast %14 : vector<1x32xf32> to vector<2x32xf32>
    %16 = arith.mulf %13, %15 : vector<2x32xf32>
    %cst_12 = arith.constant dense<0.000000e+00> : vector<2xf32>
    %17 = vector.multi_reduction <add>, %16, %cst_12 [1] : vector<2x32xf32> to vector<2xf32>
    %18 = vector.shape_cast %17 : vector<2xf32> to vector<2x1xf32>
    %19 = arith.addf %12, %18 : vector<2x1xf32>
    %c0_13 = arith.constant 0 : index
    %c0_14 = arith.constant 0 : index
    %20 = memref.load %arg6[%c0_13, %c0_14] : memref<1x1xf32, #tpu.memory_space<smem>>
    %21 = vector.broadcast %20 : f32 to vector<2x1xf32>
    %22 = arith.addf %19, %21 : vector<2x1xf32>
    %23 = arith.negf %22 : vector<2x1xf32>
    %24 = math.exp %23 : vector<2x1xf32>
    %cst_15 = arith.constant 1.000000e+00 : f32
    %25 = vector.broadcast %cst_15 : f32 to vector<2x1xf32>
    %26 = arith.addf %25, %24 : vector<2x1xf32>
    %27 = arith.divf %25, %26 : vector<2x1xf32>
    %c0_16 = arith.constant 0 : index
    %c0_17 = arith.constant 0 : index
    %28 = vector.load %arg7[%c0_16, %c0_17] : memref<2x1xf32, #tpu.memory_space<vmem>>, vector<2x1xf32>
    tpu.vector_store %arg7[%c0_16, %c0_17], %27 {strides = array<i32>} : memref<2x1xf32, #tpu.memory_space<vmem>>, vector<2x1xf32>,
    return
  }
}

</mosaic_0001>

<bundles_post_ra>
// kernel: tpu_custom_call.1
= control target key start
LH: loop header
LB: loop body
LE: loop exit
PB: predicated region body
PF: predicated region fallthrough
CT: control target
= control target key end

     0   :  { %13 = vsyncpa [#allocation4], 0  ;;  %s245_s0 = inlined_call_operand.vmem [shape: f32[2,48], index: 0, kind: input, shape index: {}]   ;;  %s246_s1 = inlined_call_operand.hbm [shape: f32[2,64], index: 1, kind: input, shape index: {}]   ;;  %s247_s2 = inlined_call_operand.hbm [shape: f32[2,32], index: 2, kind: input, shape index: {}]   ;;  %s248_s3 = inlined_call_operand.vmem [shape: f32[1,48], index: 3, kind: input, shape index: {}]   ;;  %s249_s4 = inlined_call_operand.vmem [shape: f32[1,64], index: 4, kind: input, shape index: {}]   ;;  %s250_s5 = inlined_call_operand.vmem [shape: f32[1,32], index: 5, kind: input, shape index: {}]   ;;  %s251_s6 = inlined_call_operand.<no memory space> [shape: f32[1,1], index: 6, kind: input, shape index: {}]   ;;  %s252_s7 = inlined_call_operand.vmem [shape: f32[2,1], index: 7, kind: output, shape index: {}]  }
   0x1   :  { %s22_s26 = sshll.u32 %s246_s1, 4  ;;  %s23_s26 = int_to_ptr.hbm [resolvable:$true] %s22_s26 }
   0x2   :  { %14 = vsyncpa [#allocation6], 0  ;;  %s179_s27 = smov [#allocation3]   ;;  %s33_s8 = sshll.u32 %s247_s2, 4  ;;  %s34_s8 = int_to_ptr.hbm [resolvable:$true] %s33_s8 }
   0x3   :  { %s24_s28 = sshll.u32 %s179_s27, 4  ;;  %s180_s9 = smov [#allocation5]   ;;  %s25_s28 = int_to_ptr.vmem [resolvable:$true] %s24_s28 }
   0x4   :  { %27 = dma.hbm_to_vmem [thread:$0]  %s23_s26, 32, %s25_s28, [#allocation4]  }
   0x5   :  { %s35_s10 = sshll.u32 %s180_s9, 4  ;;  %s36_s10 = int_to_ptr.vmem [resolvable:$true] %s35_s10 }
   0x6   :  { %38 = dma.hbm_to_vmem [thread:$0]  %s34_s8, 32, %s36_s10, [#allocation6]  }
   0x7   :  { %175 = dma.done.wait [#allocation4], 32  }
   0x8   :  { %176 = vsyncadd [#allocation4], 4294967264 }
   0x9   :  { %177 = dma.done.wait [#allocation6], 32  }
   0xa   :  { %178 = vsyncadd [#allocation6], 4294967264  ;;  %v55_v0 = vld [vmem:[%s245_s0] sm:$0x3]  ;;  %vm61_vm0 = vcmask 386048   ;;  %vm82_vm1 = vcmask 254976   ;;  %v88_v16 = vstv %s251_s6 }
   0xb   :  { %v120_v1 = vld [vmem:[%s248_s3] ss:$0 sm:$0xff]  ;;  %v76_v4 = vld [vmem:[#allocation5] sm:$0x3]  ;;  %vm71_vm2 = vcmask 517120   ;;  %vm109_vm5 = vcmask 1024  }
   0xc   :  { %v121_v2 = vld [vmem:[%s249_s4] ss:$0 sm:$0xff]  ;;  %v60_v3 = vmul.f32 %v120_v1, %v55_v0 }
   0xd   :  { %v122_v5 = vld [vmem:[%s250_s5] ss:$0 sm:$0xff] }
   0xe   :  { %v65_v6 = vld [vmem:[#allocation3] sm:$0x3]  ;;  %v62_v7 = vsel %vm61_vm0, %v60_v3, 0.0  ;;  %v81_v8 = vmul.f32 %v122_v5, %v76_v4 }
   0xf   :  { %63 = vadd.xlane.f32.xlu0 %v62_v7  ;;  %v70_v9 = vmul.f32 %v121_v2, %v65_v6 }
  0x10   :  { %v83_v10 = vsel %vm82_vm1, %v81_v8, 0.0 }
  0x11   :  { %84 = vadd.xlane.f32.xlu1 %v83_v10  ;;  %v72_v11 = vsel %vm71_vm2, %v70_v9, 0.0 }
  0x17   :  { %73 = vadd.xlane.f32.xlu0 %v72_v11 }
  0x82   :  { %v64_v12 = vpop.xlane.xlu0 %63 }
  0x84   :  { %v85_v14 = vpop.xlane.xlu1 %84 }
  0x8a   :  { %v74_v13 = vpop.xlane.xlu0 %73 }
  0x8b   :  { %v75_v15 = vadd.f32 %v74_v13, %v64_v12 }
  0x8d   :  { %v86_v17 = vadd.f32 %v85_v14, %v75_v15 }
  0x8f   :  { %v89_v18 = vadd.f32 %v88_v16, %v86_v17 }
  0x91   :  { %v117_v19 = vmul.f32 -1.442695, %v89_v18 }
  0x93   :  { %123 = vpow2.f32 %v117_v19 }
  0x99   :  { %v124_v20 = vpop.eup %123 }
  0x9a   :  { %v93_v21 = vadd.f32 1.0, %v124_v20 }
  0x9c   :  { %125 = vrcp.f32 %v93_v21  ;;  %v105_v25 = vand.u32 2147483648, %v93_v21  ;;  %v103_v27 = vand.u32 2147483647, %v93_v21  ;;  %vm99_vm4 = vweird.f32 %v93_v21 }
  0x9e   :  { %v106_v29 = vor.u32 1.1754944e-38, %v105_v25  ;;  %vm104_vm7 = vcmp.eq.f32.partialorder %v103_v27, 8.507059e+37 }
  0xa2   :  { %v126_v22 = vpop.eup %125 }
  0xa3   :  { %v95_v23 = vmul.f32 %v126_v22, %v93_v21  ;;  %vm100_vm3 = vweird.f32 %v126_v22 }
  0xa4   :  { %vm101_vm6 = vmor %vm99_vm4, %vm100_vm3 }
  0xa5   :  { %v96_v24 = vsub.f32 1.0, %v95_v23 }
  0xa7   :  { %v97_v26 = vmul.f32 %v126_v22, %v96_v24 }
  0xa9   :  { %v98_v28 = vadd.f32 %v126_v22, %v97_v26 }
  0xab   :  { %v102_v30 = vsel %vm101_vm6, %v126_v22, %v98_v28 }
  0xac   :  { %v107_v31 = vsel %vm104_vm7, %v106_v29, %v102_v30 }
  0xad   :  { %110 = vst.msk [vmem:[%s252_s7] sm:$0x3] %vm109_vm5, %v107_v31 }
  0xae   :  { %115 = vsyncpa [#allocation4], 1 }
  0xaf   :  { %116 = vsyncpa [#allocation6], 1 }

</bundles_post_ra>
